<compile_context>
chip_gen: v5e
topology: v5e:2x2
jax: 0.10.0
libtpu: 0.0.40
codegen_flags: <defaults>
</compile_context>

<pallas_src>
import jax
import jax.numpy as jnp
from jax import lax
from jax.experimental import pallas as pl
from jax.experimental.pallas import tpu as pltpu


def _round_up(x, n):
    return (x + n - 1) // n * n


# ----------------------------- Pallas kernel ------------------------------- #

def _make_mlp_pool_kernel(n_layers, pool_mod, K):
    """MLP (1x1 conv == channel matmul) + ReLU stack, then max/avg pool over K.

    Kernel tile layout: x_ref is (K, C0, tile_m) bf16 — neighbour index K on
    the leading (slow) axis, channels on sublanes, sampled points on lanes.
    Each k-slice is a contiguous (C0, tile_m) slab that feeds the MXU directly;
    pooling over K becomes a running elementwise max/add on the VPU (no XLU
    cross-lane reduce, no transpose before the store).
    """

    def kernel(x_ref, *args):
        out_ref = args[-1]
        params = args[:-1]                       # w0, b0, w1, b1, ...

        # Hoist the (tiny) weight/bias loads out of the K loop.
        ws = [params[2 * l][...] for l in range(n_layers)]   # (C_out, C_in) bf16
        bs = [params[2 * l + 1][...] for l in range(n_layers)]  # (C_out, 1) f32

        inv_k = 1.0 / float(K)
        pooled = None
        for k in range(K):                       # static unroll; K is small
            h = x_ref[k]                         # (C0, tile_m) bf16, contiguous
            for l in range(n_layers):
                acc = lax.dot_general(           # bf16 MXU matmul, f32 accumulate
                    ws[l], h, (((1,), (0,)), ((), ())),
                    preferred_element_type=jnp.float32)       # (C_out, tile_m)
                act = jnp.maximum(acc + bs[l], 0.0)           # bias + ReLU in f32
                h = act.astype(jnp.bfloat16) if l + 1 < n_layers else act
            if pooled is None:
                pooled = h
            elif pool_mod == 'max':
                pooled = jnp.maximum(pooled, h)
            else:                                # 'avg' -> running sum
                pooled = pooled + h
        if pool_mod == 'avg':
            pooled = pooled * inv_k              # reciprocal-multiply, no divide

        out_ref[...] = pooled.astype(out_ref.dtype)   # (C_last, tile_m), lane-dense

    return kernel


def _pick_tile_m(rows, K, c0, channels, vmem_budget_bytes):
    """Largest 128-multiple row tile whose *padded* VMEM footprint fits the budget.

    All live buffers are counted at their physical (sublane, lane)-padded size:
    lane dim is the tile_m multiple of 128, sublane dims round up to 16 (bf16)
    or 8 (f32).  Budget is conservative (default 24 MiB) so it fits v7x's
    64 MiB VMEM with compiler-scratch headroom, yet still yields >=512-row
    tiles for realistic channel counts.
    """
    c_max = max(channels)
    c_last = channels[-1]
    bytes_per_row = (
        2 * K * _round_up(c0, 16) * 2            # 2x-buffered bf16 input tile
        + 3 * _round_up(c_max, 8) * 4            # live activations (f32 acc + slack)
        + 3 * _round_up(c_last, 8) * 4)          # pooled acc + 2x-buffered f32 output
    fixed = 0                                    # grid-invariant weights/biases
    c_in = c0
    for c_out in channels:
        fixed += 2 * (_round_up(c_out, 16) * _round_up(c_in, 128) * 2   # bf16 W^T
                      + _round_up(c_out, 8) * 128 * 4)                  # f32 bias
        c_in = c_out
    avail = max(vmem_budget_bytes - fixed, 1 << 20)
    tile = max(128, (avail // bytes_per_row) // 128 * 128)
    rows128 = _round_up(rows, 128)
    tile = min(tile, rows128)
    # v7x has 2 TensorCores: keep >= 2 balanced "parallel" grid steps when possible.
    if rows128 >= 256 and rows128 // tile < 2:
        tile = max(128, _round_up(rows128 // 2, 128))
    return tile


def mlp_and_pool(grouped_kcm, weights, biases, pool_mod='max',
                 vmem_budget_bytes=24 * 1024 * 1024):
    """grouped_kcm: (K, C0, rows) f32, channel-leading / lane-dense layout.

    weights[i]: (C_in, C_out) f32 (Conv2d 1x1 with BN folded), biases[i]: (C_out,).
    Returns pooled features (C_last, rows) f32.
    """
    K, C0, rows = grouped_kcm.shape
    n_layers = len(weights)
    channels = [w.shape[1] for w in weights]
    C_last = channels[-1]
    assert weights[0].shape[0] == C0

    c0p = _round_up(C0, 8)                       # keep the MXU contraction 8-aligned
    tile_m = _pick_tile_m(rows, K, c0p, channels, vmem_budget_bytes)
    rows_pad = _round_up(rows, tile_m)

    g = grouped_kcm
    if c0p != C0 or rows_pad != rows:
        g = jnp.pad(g, ((0, 0), (0, c0p - C0), (0, rows_pad - rows)))
    g = g.astype(jnp.bfloat16)                   # halve HBM traffic of the big tensor

    params = []
    for li, (w, b) in enumerate(zip(weights, biases)):
        w_t = jnp.asarray(w, jnp.float32).T      # (C_out, C_in)
        if li == 0 and c0p != C0:
            w_t = jnp.pad(w_t, ((0, 0), (0, c0p - C0)))
        params.append(w_t.astype(jnp.bfloat16))
        params.append(jnp.asarray(b, jnp.float32).reshape(-1, 1))   # (C_out, 1)

    x_spec = pl.BlockSpec((K, c0p, tile_m), lambda i: (0, 0, i))
    out_spec = pl.BlockSpec((C_last, tile_m), lambda i: (0, i))     # M on lanes
    # Grid-invariant weights/biases: full-block, constant index map => DMA'd once.
    param_specs = [pl.BlockSpec(p.shape, lambda i: (0, 0)) for p in params]

    kernel = _make_mlp_pool_kernel(n_layers, pool_mod, K)
    out = pl.pallas_call(
        kernel,
        out_shape=jax.ShapeDtypeStruct((C_last, rows_pad), jnp.float32),
        grid=(rows_pad // tile_m,),
        in_specs=[x_spec] + param_specs,
        out_specs=out_spec,
        compiler_params=pltpu.CompilerParams(
            dimension_semantics=("parallel",),
            vmem_limit_bytes=40 * 1024 * 1024),   # < v7x's 64 MiB, ample headroom
    )(g, *params)
    return out[:, :rows]                          # strip row padding


# ------------------------- plain-JAX glue (sampling) ------------------------ #
# TODO(synk): D-FPS and ball-query are sequential / gather-dominated; kept in
# plain JAX.  Fusing the gather into the Pallas kernel (scalar-prefetched idx +
# manual DMA from pl.ANY tables) is the next structural win.

def farthest_point_sample(xyz, npoint):
    """D-FPS. xyz: (B, N, 3) -> (B, npoint) int32 indices (starts at index 0)."""
    B, N, _ = xyz.shape

    def body(i, state):
        idxs, dists, farthest = state
        idxs = idxs.at[:, i].set(farthest)
        centroid = jnp.take_along_axis(xyz, farthest[:, None, None], axis=1)  # (B,1,3)
        d = jnp.sum((xyz - centroid) ** 2, axis=-1)                           # (B,N)
        dists = jnp.minimum(dists, d)
        farthest = jnp.argmax(dists, axis=-1).astype(jnp.int32)
        return idxs, dists, farthest

    idxs0 = jnp.zeros((B, npoint), jnp.int32)
    dists0 = jnp.full((B, N), 1e10, jnp.float32)
    far0 = jnp.zeros((B,), jnp.int32)
    idxs, _, _ = lax.fori_loop(0, npoint, body, (idxs0, dists0, far0))
    return idxs


def query_and_group_kcm(xyz, new_xyz, feats_nlast, radius, K, min_radius=0.0,
                        use_xyz=True, normalize_xyz=False):
    """QueryAndGroup: ball query + grouping, emitted in kernel layout.

    xyz: (B, N, 3), new_xyz: (B, M, 3), feats_nlast: (B, N, C) or None.
    Returns grouped features (K, C0, B*M) with row index = b*M + m.
    """
    B, N, _ = xyz.shape
    M = new_xyz.shape[1]

    d2 = jnp.sum((new_xyz[:, :, None, :] - xyz[:, None, :, :]) ** 2, axis=-1)  # (B,M,N)
    mask = d2 < radius * radius
    if min_radius > 0.0:
        mask = mask & (d2 >= min_radius * min_radius)
    # First K in-ball indices in index order (CUDA ball_query semantics); slots
    # beyond the in-ball count repeat the group's first neighbour; fully-empty
    # groups fall back to index 0 (matches the zero-initialised CUDA output).
    key = jnp.where(mask, jnp.arange(N)[None, None, :], N)
    key_sorted = jnp.sort(key, axis=-1)[:, :, :K]                              # (B,M,K)
    first = key_sorted[:, :, :1]
    first = jnp.where(first == N, 0, first)
    idx = jnp.where(key_sorted == N, first, key_sorted).astype(jnp.int32)

    grouped_xyz = jax.vmap(lambda pts, ids: pts[ids])(xyz, idx)                # (B,M,K,3)
    grouped_xyz = grouped_xyz - new_xyz[:, :, None, :]
    if normalize_xyz:
        grouped_xyz = grouped_xyz / radius

    if feats_nlast is not None:
        grouped_f = jax.vmap(lambda f, ids: f[ids])(feats_nlast, idx)          # (B,M,K,C)
        grouped = (jnp.concatenate([grouped_xyz, grouped_f], axis=-1)
                   if use_xyz else grouped_f)
    else:
        assert use_xyz
        grouped = grouped_xyz
    C0 = grouped.shape[-1]
    # (B,M,K,C0) -> (K, C0, B*M): single layout copy; disappears once the gather
    # is fused into the kernel (see module-level TODO).
    return jnp.transpose(grouped, (2, 3, 0, 1)).reshape(K, C0, B * M)


# ----------------------------- module forward ------------------------------ #

def base_point_sa_forward(points_xyz, features, *, num_point, radii,
                          sample_nums, params, use_xyz=True, pool_mod='max',
                          normalize_xyz=False, dilated_group=False):
    """Equivalent of BasePointSAModule.forward (indices/target_xyz = None).

    points_xyz: (B, N, 3), features: (B, C, N) or None.
    Returns (new_xyz (B, M, 3), new_features (B, sum_Cout, M), indices (B, M)).
    """
    B, N, _ = points_xyz.shape
    indices = farthest_point_sample(points_xyz, num_point)                     # (B,M)
    new_xyz = jax.vmap(lambda pts, ids: pts[ids])(points_xyz, indices)         # (B,M,3)
    feats_nlast = None if features is None else jnp.transpose(features, (0, 2, 1))

    outs = []
    for i, (radius, K) in enumerate(zip(radii, sample_nums)):
        min_radius = radii[i - 1] if (dilated_group and i != 0) else 0.0
        g_kcm = query_and_group_kcm(points_xyz, new_xyz, feats_nlast, radius, K,
                                    min_radius=min_radius, use_xyz=use_xyz,
                                    normalize_xyz=normalize_xyz)               # (K,C0,B*M)
        ws, bs = params[i]
        pooled = mlp_and_pool(g_kcm, ws, bs, pool_mod=pool_mod)                # (Cout,B*M)
        # Channel axis already leading; only a slow-axis permute remains.
        outs.append(pooled.reshape(-1, B, num_point).transpose(1, 0, 2))       # (B,Cout,M)

    return new_xyz, jnp.concatenate(outs, axis=1), indices


def init_params(key, mlp_channels):
    """Deterministic stand-ins for Conv2d(1x1) weights with BN(eval) folded in.

    A real port must fold the BN scale/shift into (w, b) before calling the
    kernel; here random (w, b) play that role for the demo.
    """
    params = []
    for chans in mlp_channels:
        ws, bs = [], []
        for cin, cout in zip(chans[:-1], chans[1:]):
            key, kw, kb = jax.random.split(key, 3)
            ws.append(0.1 * jax.random.normal(kw, (cin, cout), jnp.float32))
            bs.append(0.05 * jax.random.normal(kb, (cout,), jnp.float32))
        params.append((ws, bs))
    return params


if __name__ == "__main__":
    key = jax.random.PRNGKey(0)
    B, N, C = 2, 64, 4
    num_point = 16
    radii = [0.5, 1.0]
    sample_nums = [8, 16]
    use_xyz = True
    mlp_channels = [[3 + C, 16, 32], [3 + C, 16, 32]]   # C_in includes xyz

    k1, k2, kp, kt = jax.random.split(key, 4)
    points_xyz = jax.random.uniform(k1, (B, N, 3), jnp.float32)       # (B,N,3)
    features = jax.random.normal(k2, (B, C, N), jnp.float32)          # (B,C,N)
    params = init_params(kp, mlp_channels)

    new_xyz, new_features, indices = base_point_sa_forward(
        points_xyz, features,
        num_point=num_point, radii=radii, sample_nums=sample_nums,
        params=params, use_xyz=use_xyz, pool_mod='max')

    jax.block_until_ready((new_xyz, new_features, indices))
    assert new_xyz.shape == (B, num_point, 3)
    assert new_features.shape == (B, sum(m[-1] for m in mlp_channels), num_point)
    assert indices.shape == (B, num_point)

    # Standalone check of the Pallas MLP+pool against a pure-JAX f32 reference
    # (loose tolerance: kernel runs bf16 inputs/weights with f32 accumulation).
    K_t, rows_t = 16, 32
    g_test = jax.random.normal(kt, (K_t, 3 + C, rows_t), jnp.float32)  # (K,C0,rows)
    ws_t, bs_t = params[1]
    ref = g_test
    for w, b in zip(ws_t, bs_t):
        ref = jnp.maximum(jnp.einsum('cd,kcm->kdm', w, ref) + b[None, :, None], 0.0)
    ref = jnp.max(ref, axis=0)                                         # (C_last, rows)
    out = mlp_and_pool(g_test, ws_t, bs_t, pool_mod='max')
    jax.block_until_ready(out)
    assert out.shape == ref.shape
    assert jnp.allclose(out, ref, rtol=5e-2, atol=5e-2), \
        float(jnp.max(jnp.abs(out - ref)))

    # Also sanity-check the avg-pool path once.
    out_avg = mlp_and_pool(g_test, ws_t, bs_t, pool_mod='avg')
    jax.block_until_ready(out_avg)
    assert out_avg.shape == ref.shape

    print("KERNEL_OK")
</pallas_src>

<mosaic_0001>
module attributes {stable_mosaic.version = 11 : i64} {
  func.func @kernel(%arg0: i32, %arg1: memref<8x8x128xbf16, #tpu.memory_space<vmem>>, %arg2: memref<16x8xbf16, #tpu.memory_space<vmem>>, %arg3: memref<16x1xf32, #tpu.memory_space<vmem>>, %arg4: memref<32x16xbf16, #tpu.memory_space<vmem>>, %arg5: memref<32x1xf32, #tpu.memory_space<vmem>>, %arg6: memref<32x128xf32, #tpu.memory_space<vmem>>) attributes {dimension_semantics = [#tpu.dimension_semantics<parallel>], iteration_bounds = array<i64: 1>, scalar_prefetch = 0 : i64, scratch_operands = 0 : i64, tpu.core_type = #tpu.core_type<tc>, window_params = [{transform_indices = @transform_0, window_bounds = array<i64: 8, 8, 128>}, {pipeline_mode = #tpu.pipeline_mode<synchronous>, transform_indices = @transform_1, window_bounds = array<i64: 16, 8>}, {pipeline_mode = #tpu.pipeline_mode<synchronous>, transform_indices = @transform_2, window_bounds = array<i64: 16, 1>}, {pipeline_mode = #tpu.pipeline_mode<synchronous>, transform_indices = @transform_3, window_bounds = array<i64: 32, 16>}, {pipeline_mode = #tpu.pipeline_mode<synchronous>, transform_indices = @transform_4, window_bounds = array<i64: 32, 1>}, {transform_indices = @transform_5, window_bounds = array<i64: 32, 128>}]} {
    %c0 = arith.constant 0 : index
    %c0_0 = arith.constant 0 : index
    %0 = vector.load %arg2[%c0, %c0_0] : memref<16x8xbf16, #tpu.memory_space<vmem>>, vector<16x8xbf16>
    %c0_1 = arith.constant 0 : index
    %c0_2 = arith.constant 0 : index
    %1 = vector.load %arg4[%c0_1, %c0_2] : memref<32x16xbf16, #tpu.memory_space<vmem>>, vector<32x16xbf16>
    %c0_3 = arith.constant 0 : index
    %c0_4 = arith.constant 0 : index
    %2 = vector.load %arg3[%c0_3, %c0_4] : memref<16x1xf32, #tpu.memory_space<vmem>>, vector<16x1xf32>
    %c0_5 = arith.constant 0 : index
    %c0_6 = arith.constant 0 : index
    %3 = vector.load %arg5[%c0_5, %c0_6] : memref<32x1xf32, #tpu.memory_space<vmem>>, vector<32x1xf32>
    %c0_7 = arith.constant 0 : index
    %c0_8 = arith.constant 0 : index
    %c0_9 = arith.constant 0 : index
    %4 = vector.load %arg1[%c0_7, %c0_8, %c0_9] : memref<8x8x128xbf16, #tpu.memory_space<vmem>>, vector<1x8x128xbf16>
    %5 = vector.shape_cast %4 : vector<1x8x128xbf16> to vector<8x128xbf16>
    %cst = arith.constant dense<0.000000e+00> : vector<16x128xf32>
    %6 = tpu.matmul %0, %5, %cst {dimension_numbers = #tpu.dot_dimension_numbers<[1], [0], [0], [1], [0, 0, 1, 1], [], []>} : vector<16x8xbf16>, vector<8x128xbf16>, vector<16x128xf32> -> vector<16x128xf32>
    %7 = vector.broadcast %2 : vector<16x1xf32> to vector<16x128xf32>
    %8 = arith.addf %6, %7 : vector<16x128xf32>
    %cst_10 = arith.constant 0.000000e+00 : f32
    %9 = vector.broadcast %cst_10 : f32 to vector<16x128xf32>
    %10 = arith.maximumf %8, %9 : vector<16x128xf32>
    %11 = arith.truncf %10 : vector<16x128xf32> to vector<16x128xbf16>
    %cst_11 = arith.constant dense<0.000000e+00> : vector<32x128xf32>
    %12 = tpu.matmul %1, %11, %cst_11 {dimension_numbers = #tpu.dot_dimension_numbers<[1], [0], [0], [1], [0, 0, 1, 1], [], []>} : vector<32x16xbf16>, vector<16x128xbf16>, vector<32x128xf32> -> vector<32x128xf32>
    %13 = vector.broadcast %3 : vector<32x1xf32> to vector<32x128xf32>
    %14 = arith.addf %12, %13 : vector<32x128xf32>
    %cst_12 = arith.constant 0.000000e+00 : f32
    %15 = vector.broadcast %cst_12 : f32 to vector<32x128xf32>
    %16 = arith.maximumf %14, %15 : vector<32x128xf32>
    %c1 = arith.constant 1 : index
    %c0_13 = arith.constant 0 : index
    %c0_14 = arith.constant 0 : index
    %17 = vector.load %arg1[%c1, %c0_13, %c0_14] : memref<8x8x128xbf16, #tpu.memory_space<vmem>>, vector<1x8x128xbf16>
    %18 = vector.shape_cast %17 : vector<1x8x128xbf16> to vector<8x128xbf16>
    %cst_15 = arith.constant dense<0.000000e+00> : vector<16x128xf32>
    %19 = tpu.matmul %0, %18, %cst_15 {dimension_numbers = #tpu.dot_dimension_numbers<[1], [0], [0], [1], [0, 0, 1, 1], [], []>} : vector<16x8xbf16>, vector<8x128xbf16>, vector<16x128xf32> -> vector<16x128xf32>
    %20 = vector.broadcast %2 : vector<16x1xf32> to vector<16x128xf32>
    %21 = arith.addf %19, %20 : vector<16x128xf32>
    %cst_16 = arith.constant 0.000000e+00 : f32
    %22 = vector.broadcast %cst_16 : f32 to vector<16x128xf32>
    %23 = arith.maximumf %21, %22 : vector<16x128xf32>
    %24 = arith.truncf %23 : vector<16x128xf32> to vector<16x128xbf16>
    %cst_17 = arith.constant dense<0.000000e+00> : vector<32x128xf32>
    %25 = tpu.matmul %1, %24, %cst_17 {dimension_numbers = #tpu.dot_dimension_numbers<[1], [0], [0], [1], [0, 0, 1, 1], [], []>} : vector<32x16xbf16>, vector<16x128xbf16>, vector<32x128xf32> -> vector<32x128xf32>
    %26 = vector.broadcast %3 : vector<32x1xf32> to vector<32x128xf32>
    %27 = arith.addf %25, %26 : vector<32x128xf32>
    %cst_18 = arith.constant 0.000000e+00 : f32
    %28 = vector.broadcast %cst_18 : f32 to vector<32x128xf32>
    %29 = arith.maximumf %27, %28 : vector<32x128xf32>
    %30 = arith.maximumf %16, %29 : vector<32x128xf32>
    %c2 = arith.constant 2 : index
    %c0_19 = arith.constant 0 : index
    %c0_20 = arith.constant 0 : index
    %31 = vector.load %arg1[%c2, %c0_19, %c0_20] : memref<8x8x128xbf16, #tpu.memory_space<vmem>>, vector<1x8x128xbf16>
    %32 = vector.shape_cast %31 : vector<1x8x128xbf16> to vector<8x128xbf16>
    %cst_21 = arith.constant dense<0.000000e+00> : vector<16x128xf32>
    %33 = tpu.matmul %0, %32, %cst_21 {dimension_numbers = #tpu.dot_dimension_numbers<[1], [0], [0], [1], [0, 0, 1, 1], [], []>} : vector<16x8xbf16>, vector<8x128xbf16>, vector<16x128xf32> -> vector<16x128xf32>
    %34 = vector.broadcast %2 : vector<16x1xf32> to vector<16x128xf32>
    %35 = arith.addf %33, %34 : vector<16x128xf32>
    %cst_22 = arith.constant 0.000000e+00 : f32
    %36 = vector.broadcast %cst_22 : f32 to vector<16x128xf32>
    %37 = arith.maximumf %35, %36 : vector<16x128xf32>
    %38 = arith.truncf %37 : vector<16x128xf32> to vector<16x128xbf16>
    %cst_23 = arith.constant dense<0.000000e+00> : vector<32x128xf32>
    %39 = tpu.matmul %1, %38, %cst_23 {dimension_numbers = #tpu.dot_dimension_numbers<[1], [0], [0], [1], [0, 0, 1, 1], [], []>} : vector<32x16xbf16>, vector<16x128xbf16>, vector<32x128xf32> -> vector<32x128xf32>
    %40 = vector.broadcast %3 : vector<32x1xf32> to vector<32x128xf32>
    %41 = arith.addf %39, %40 : vector<32x128xf32>
    %cst_24 = arith.constant 0.000000e+00 : f32
    %42 = vector.broadcast %cst_24 : f32 to vector<32x128xf32>
    %43 = arith.maximumf %41, %42 : vector<32x128xf32>
    %44 = arith.maximumf %30, %43 : vector<32x128xf32>
    %c3 = arith.constant 3 : index
    %c0_25 = arith.constant 0 : index
    %c0_26 = arith.constant 0 : index
    %45 = vector.load %arg1[%c3, %c0_25, %c0_26] : memref<8x8x128xbf16, #tpu.memory_space<vmem>>, vector<1x8x128xbf16>
    %46 = vector.shape_cast %45 : vector<1x8x128xbf16> to vector<8x128xbf16>
    %cst_27 = arith.constant dense<0.000000e+00> : vector<16x128xf32>
    %47 = tpu.matmul %0, %46, %cst_27 {dimension_numbers = #tpu.dot_dimension_numbers<[1], [0], [0], [1], [0, 0, 1, 1], [], []>} : vector<16x8xbf16>, vector<8x128xbf16>, vector<16x128xf32> -> vector<16x128xf32>
    %48 = vector.broadcast %2 : vector<16x1xf32> to vector<16x128xf32>
    %49 = arith.addf %47, %48 : vector<16x128xf32>
    %cst_28 = arith.constant 0.000000e+00 : f32
    %50 = vector.broadcast %cst_28 : f32 to vector<16x128xf32>
    %51 = arith.maximumf %49, %50 : vector<16x128xf32>
    %52 = arith.truncf %51 : vector<16x128xf32> to vector<16x128xbf16>
    %cst_29 = arith.constant dense<0.000000e+00> : vector<32x128xf32>
    %53 = tpu.matmul %1, %52, %cst_29 {dimension_numbers = #tpu.dot_dimension_numbers<[1], [0], [0], [1], [0, 0, 1, 1], [], []>} : vector<32x16xbf16>, vector<16x128xbf16>, vector<32x128xf32> -> vector<32x128xf32>
    %54 = vector.broadcast %3 : vector<32x1xf32> to vector<32x128xf32>
    %55 = arith.addf %53, %54 : vector<32x128xf32>
    %cst_30 = arith.constant 0.000000e+00 : f32
    %56 = vector.broadcast %cst_30 : f32 to vector<32x128xf32>
    %57 = arith.maximumf %55, %56 : vector<32x128xf32>
    %58 = arith.maximumf %44, %57 : vector<32x128xf32>
    %c4 = arith.constant 4 : index
    %c0_31 = arith.constant 0 : index
    %c0_32 = arith.constant 0 : index
    %59 = vector.load %arg1[%c4, %c0_31, %c0_32] : memref<8x8x128xbf16, #tpu.memory_space<vmem>>, vector<1x8x128xbf16>
    %60 = vector.shape_cast %59 : vector<1x8x128xbf16> to vector<8x128xbf16>
    %cst_33 = arith.constant dense<0.000000e+00> : vector<16x128xf32>
    %61 = tpu.matmul %0, %60, %cst_33 {dimension_numbers = #tpu.dot_dimension_numbers<[1], [0], [0], [1], [0, 0, 1, 1], [], []>} : vector<16x8xbf16>, vector<8x128xbf16>, vector<16x128xf32> -> vector<16x128xf32>
    %62 = vector.broadcast %2 : vector<16x1xf32> to vector<16x128xf32>
    %63 = arith.addf %61, %62 : vector<16x128xf32>
    %cst_34 = arith.constant 0.000000e+00 : f32
    %64 = vector.broadcast %cst_34 : f32 to vector<16x128xf32>
    %65 = arith.maximumf %63, %64 : vector<16x128xf32>
    %66 = arith.truncf %65 : vector<16x128xf32> to vector<16x128xbf16>
    %cst_35 = arith.constant dense<0.000000e+00> : vector<32x128xf32>
    %67 = tpu.matmul %1, %66, %cst_35 {dimension_numbers = #tpu.dot_dimension_numbers<[1], [0], [0], [1], [0, 0, 1, 1], [], []>} : vector<32x16xbf16>, vector<16x128xbf16>, vector<32x128xf32> -> vector<32x128xf32>
    %68 = vector.broadcast %3 : vector<32x1xf32> to vector<32x128xf32>
    %69 = arith.addf %67, %68 : vector<32x128xf32>
    %cst_36 = arith.constant 0.000000e+00 : f32
    %70 = vector.broadcast %cst_36 : f32 to vector<32x128xf32>
    %71 = arith.maximumf %69, %70 : vector<32x128xf32>
    %72 = arith.maximumf %58, %71 : vector<32x128xf32>
    %c5 = arith.constant 5 : index
    %c0_37 = arith.constant 0 : index
    %c0_38 = arith.constant 0 : index
    %73 = vector.load %arg1[%c5, %c0_37, %c0_38] : memref<8x8x128xbf16, #tpu.memory_space<vmem>>, vector<1x8x128xbf16>
    %74 = vector.shape_cast %73 : vector<1x8x128xbf16> to vector<8x128xbf16>
    %cst_39 = arith.constant dense<0.000000e+00> : vector<16x128xf32>
    %75 = tpu.matmul %0, %74, %cst_39 {dimension_numbers = #tpu.dot_dimension_numbers<[1], [0], [0], [1], [0, 0, 1, 1], [], []>} : vector<16x8xbf16>, vector<8x128xbf16>, vector<16x128xf32> -> vector<16x128xf32>
    %76 = vector.broadcast %2 : vector<16x1xf32> to vector<16x128xf32>
    %77 = arith.addf %75, %76 : vector<16x128xf32>
    %cst_40 = arith.constant 0.000000e+00 : f32
    %78 = vector.broadcast %cst_40 : f32 to vector<16x128xf32>
    %79 = arith.maximumf %77, %78 : vector<16x128xf32>
    %80 = arith.truncf %79 : vector<16x128xf32> to vector<16x128xbf16>
    %cst_41 = arith.constant dense<0.000000e+00> : vector<32x128xf32>
    %81 = tpu.matmul %1, %80, %cst_41 {dimension_numbers = #tpu.dot_dimension_numbers<[1], [0], [0], [1], [0, 0, 1, 1], [], []>} : vector<32x16xbf16>, vector<16x128xbf16>, vector<32x128xf32> -> vector<32x128xf32>
    %82 = vector.broadcast %3 : vector<32x1xf32> to vector<32x128xf32>
    %83 = arith.addf %81, %82 : vector<32x128xf32>
    %cst_42 = arith.constant 0.000000e+00 : f32
    %84 = vector.broadcast %cst_42 : f32 to vector<32x128xf32>
    %85 = arith.maximumf %83, %84 : vector<32x128xf32>
    %86 = arith.maximumf %72, %85 : vector<32x128xf32>
    %c6 = arith.constant 6 : index
    %c0_43 = arith.constant 0 : index
    %c0_44 = arith.constant 0 : index
    %87 = vector.load %arg1[%c6, %c0_43, %c0_44] : memref<8x8x128xbf16, #tpu.memory_space<vmem>>, vector<1x8x128xbf16>
    %88 = vector.shape_cast %87 : vector<1x8x128xbf16> to vector<8x128xbf16>
    %cst_45 = arith.constant dense<0.000000e+00> : vector<16x128xf32>
    %89 = tpu.matmul %0, %88, %cst_45 {dimension_numbers = #tpu.dot_dimension_numbers<[1], [0], [0], [1], [0, 0, 1, 1], [], []>} : vector<16x8xbf16>, vector<8x128xbf16>, vector<16x128xf32> -> vector<16x128xf32>
    %90 = vector.broadcast %2 : vector<16x1xf32> to vector<16x128xf32>
    %91 = arith.addf %89, %90 : vector<16x128xf32>
    %cst_46 = arith.constant 0.000000e+00 : f32
    %92 = vector.broadcast %cst_46 : f32 to vector<16x128xf32>
    %93 = arith.maximumf %91, %92 : vector<16x128xf32>
    %94 = arith.truncf %93 : vector<16x128xf32> to vector<16x128xbf16>
    %cst_47 = arith.constant dense<0.000000e+00> : vector<32x128xf32>
    %95 = tpu.matmul %1, %94, %cst_47 {dimension_numbers = #tpu.dot_dimension_numbers<[1], [0], [0], [1], [0, 0, 1, 1], [], []>} : vector<32x16xbf16>, vector<16x128xbf16>, vector<32x128xf32> -> vector<32x128xf32>
    %96 = vector.broadcast %3 : vector<32x1xf32> to vector<32x128xf32>
    %97 = arith.addf %95, %96 : vector<32x128xf32>
    %cst_48 = arith.constant 0.000000e+00 : f32
    %98 = vector.broadcast %cst_48 : f32 to vector<32x128xf32>
    %99 = arith.maximumf %97, %98 : vector<32x128xf32>
    %100 = arith.maximumf %86, %99 : vector<32x128xf32>
    %c7 = arith.constant 7 : index
    %c0_49 = arith.constant 0 : index
    %c0_50 = arith.constant 0 : index
    %101 = vector.load %arg1[%c7, %c0_49, %c0_50] : memref<8x8x128xbf16, #tpu.memory_space<vmem>>, vector<1x8x128xbf16>
    %102 = vector.shape_cast %101 : vector<1x8x128xbf16> to vector<8x128xbf16>
    %cst_51 = arith.constant dense<0.000000e+00> : vector<16x128xf32>
    %103 = tpu.matmul %0, %102, %cst_51 {dimension_numbers = #tpu.dot_dimension_numbers<[1], [0], [0], [1], [0, 0, 1, 1], [], []>} : vector<16x8xbf16>, vector<8x128xbf16>, vector<16x128xf32> -> vector<16x128xf32>
    %104 = vector.broadcast %2 : vector<16x1xf32> to vector<16x128xf32>
    %105 = arith.addf %103, %104 : vector<16x128xf32>
    %cst_52 = arith.constant 0.000000e+00 : f32
    %106 = vector.broadcast %cst_52 : f32 to vector<16x128xf32>
    %107 = arith.maximumf %105, %106 : vector<16x128xf32>
    %108 = arith.truncf %107 : vector<16x128xf32> to vector<16x128xbf16>
    %cst_53 = arith.constant dense<0.000000e+00> : vector<32x128xf32>
    %109 = tpu.matmul %1, %108, %cst_53 {dimension_numbers = #tpu.dot_dimension_numbers<[1], [0], [0], [1], [0, 0, 1, 1], [], []>} : vector<32x16xbf16>, vector<16x128xbf16>, vector<32x128xf32> -> vector<32x128xf32>
    %110 = vector.broadcast %3 : vector<32x1xf32> to vector<32x128xf32>
    %111 = arith.addf %109, %110 : vector<32x128xf32>
    %cst_54 = arith.constant 0.000000e+00 : f32
    %112 = vector.broadcast %cst_54 : f32 to vector<32x128xf32>
    %113 = arith.maximumf %111, %112 : vector<32x128xf32>
    %114 = arith.maximumf %100, %113 : vector<32x128xf32>
    %c0_55 = arith.constant 0 : index
    %c0_56 = arith.constant 0 : index
    %115 = vector.load %arg6[%c0_55, %c0_56] : memref<32x128xf32, #tpu.memory_space<vmem>>, vector<32x128xf32>
    tpu.vector_store %arg6[%c0_55, %c0_56], %114 {strides = array<i32>} : memref<32x128xf32, #tpu.memory_space<vmem>>, vector<32x128xf32>,
    return
  }
  func.func @transform_0(%arg0: i32) -> (i32, i32, i32) {
    %c0_i32 = arith.constant 0 : i32
    %c0_i32_0 = arith.constant 0 : i32
    %c0_i32_1 = arith.constant 0 : i32
    return %c0_i32, %c0_i32_0, %arg0 : i32, i32, i32
  }
  func.func @transform_1(%arg0: i32) -> (i32, i32) {
    %c0_i32 = arith.constant 0 : i32
    %c0_i32_0 = arith.constant 0 : i32
    %c0_i32_1 = arith.constant 0 : i32
    return %c0_i32, %c0_i32_0 : i32, i32
  }
  func.func @transform_2(%arg0: i32) -> (i32, i32) {
    %c0_i32 = arith.constant 0 : i32
    %c0_i32_0 = arith.constant 0 : i32
    %c0_i32_1 = arith.constant 0 : i32
    return %c0_i32, %c0_i32_0 : i32, i32
  }
  func.func @transform_3(%arg0: i32) -> (i32, i32) {
    %c0_i32 = arith.constant 0 : i32
    %c0_i32_0 = arith.constant 0 : i32
    %c0_i32_1 = arith.constant 0 : i32
    return %c0_i32, %c0_i32_0 : i32, i32
  }
  func.func @transform_4(%arg0: i32) -> (i32, i32) {
    %c0_i32 = arith.constant 0 : i32
    %c0_i32_0 = arith.constant 0 : i32
    %c0_i32_1 = arith.constant 0 : i32
    return %c0_i32, %c0_i32_0 : i32, i32
  }
  func.func @transform_5(%arg0: i32) -> (i32, i32) {
    %c0_i32 = arith.constant 0 : i32
    %c0_i32_0 = arith.constant 0 : i32
    return %c0_i32, %arg0 : i32, i32
  }
}

</mosaic_0001>

<bundles_post_ra>
// kernel: tpu_custom_call.1
= control target key start
LH: loop header
LB: loop body
LE: loop exit
PB: predicated region body
PF: predicated region fallthrough
CT: control target
= control target key end

     0   :  { %vm54_vm0 = vcmask 1043456   ;;  %vm50_vm1 = vcmask 64512   ;;  %s793_s0 = inlined_call_operand.vmem [shape: bf16[8,8,128], index: 0, kind: input, shape index: {}]   ;;  %s794_s1 = inlined_call_operand.vmem [shape: bf16[16,8], index: 1, kind: input, shape index: {}]   ;;  %s795_s2 = inlined_call_operand.vmem [shape: f32[16,1], index: 2, kind: input, shape index: {}]   ;;  %s796_s3 = inlined_call_operand.vmem [shape: bf16[32,16], index: 3, kind: input, shape index: {}]   ;;  %s797_s4 = inlined_call_operand.vmem [shape: f32[32,1], index: 4, kind: input, shape index: {}]   ;;  %s798_s5 = inlined_call_operand.hbm [shape: f32[32,128], index: 5, kind: output, shape index: {}]  }
   0x1   :  { %v34_v0 = vld [vmem:[%s793_s0] sm:$0xf]  ;;  %v515_v1 = vld [vmem:[%s793_s0 + $0x4] sm:$0xf]  ;;  %v519_v6 = vld [vmem:[%s793_s0 + $0x8] sm:$0xf] }
   0x2   :  { %v56_v2 = vsel %vm54_vm0, %v34_v0, 0  ;;  %v138_v3 = vsel %vm54_vm0, %v515_v1, 0  ;;  %v625_v4 = vld [vmem:[%s794_s1] sm:$0xff]  ;;  %v523_v7 = vld [vmem:[%s793_s0 + $0xc] sm:$0xf] }
   0x3   :  { %v28_v5 = vld [vmem:[%s795_s2] sm:$0xff]  ;;  %65 = vmatpush.bf16.msra.mxu0 %v56_v2  ;;  %147 = vmatpush.bf16.msra.mxu2 %v138_v3 }
   0x4   :  { %10 = vsyncpa [#allocation3], 0  ;;  %v580_v8 = vmov 0   ;;  %v187_v9 = vsel %vm54_vm0, %v519_v6, 0  ;;  %v236_v10 = vsel %vm54_vm0, %v523_v7, 0  ;;  %v29_v11 = vld [vmem:[%s795_s2 + $0x8] sm:$0xff] }
   0x5   :  { %551 = vset.pattern.permute.xlu0 %v580_v8  ;;  %552 = vset.pattern.permute.xlu1 %v580_v8  ;;  %v659_v24 = vld [vmem:[%s796_s3 + $0x8] sm:$0xff]  ;;  %v664_v25 = vld [vmem:[%s796_s3] sm:$0xff]  ;;  %vm105_vm2 = vcmask 130048   ;;  %v527_v28 = vld [vmem:[%s793_s0 + $0x10] sm:$0xf]  ;;  %s488_s26 = sshll.u32 %s798_s5, 4  ;;  %s489_s26 = int_to_ptr.hbm [resolvable:$true] %s488_s26 }
   0x6   :  { %37 = vperm.xlu0 %551, %v28_v5   ;;  %504 = vmatmul.msk.bf16.vlgmr.msra.gmra.mxu0 %vm50_vm1, %v625_v4  ;;  %v285_v32 = vsel %vm54_vm0, %v527_v28, 0  ;;  %v30_v33 = vld [vmem:[%s797_s4] sm:$0xff]  ;;  %v32_v34 = vld [vmem:[%s797_s4 + $0x10] sm:$0xff]  ;;  %v31_v38 = vld [vmem:[%s797_s4 + $0x8] sm:$0xff]  ;;  %s582_s27 = smov 128   ;;  %s583_s28 = smov 8  }
   0x7   :  { %196 = vmatpush.bf16.msrb.mxu0 %v187_v9  ;;  %516 = vmatmul.msk.bf16.vlgmr.msra.gmra.mxu2 %vm50_vm1, %v625_v4  ;;  %v531_v39 = vld [vmem:[%s793_s0 + $0x14] sm:$0xf]  ;;  %v33_v45 = vld [vmem:[%s797_s4 + $0x18] sm:$0xff] }
   0x8   :  { %553 = vset.pattern.permute.xlu2 %v580_v8  ;;  %77 = vperm.xlu1 %552, %v30_v33   ;;  %v334_v43 = vsel %vm54_vm0, %v531_v39, 0  ;;  %v535_v49 = vld [vmem:[%s793_s0 + $0x18] sm:$0xf] }
   0x9   :  { %87 = vperm.xlu2 %553, %v32_v34   ;;  %v383_v53 = vsel %vm54_vm0, %v535_v49, 0 }
   0xb   :  { %245 = vmatpush.bf16.msra.mxu0 %v236_v10 }
   0xe   :  { %42 = vperm.xlu0 %551, %v29_v11  }
  0x10   :  { %82 = vperm.xlu1 %552, %v31_v38  }
  0x11   :  { %92 = vperm.xlu2 %553, %v33_v45  }
  0x16   :  { %520 = vmatmul.msk.bf16.vlgmr.msrb.gmra.mxu0 %vm50_vm1, %v625_v4 }
  0x26   :  { %524 = vmatmul.msk.bf16.vlgmr.msra.gmra.mxu0 %vm50_vm1, %v625_v4 }
  0x78   :  { %v649_v12 = vpop.permute.xlu0 %37 }
  0x7a   :  { %v717_v57 = vpop.permute.xlu1 %77 }
  0x80   :  { %v652_v16 = vpop.permute.xlu0 %42 }
  0x82   :  { %v722_v1 = vpop.permute.xlu1 %82 }
  0x83   :  { %v67_v13 = vpop.f32.mrf.mxu0 }
  0x84   :  { %v68_v15 = vadd.f32 %v67_v13, %v649_v12 }
  0x86   :  { %v72_v19 = vmax.f32 %v68_v15, 0.0 }
  0x8a   :  { %v149_v14 = vpop.f32.mrf.mxu2 }
  0x8b   :  { %v69_v17 = vpop.f32.mrf.mxu0  ;;  %v150_v21 = vadd.f32 %v149_v14, %v649_v12  ;;  %v727_v14 = vpop.permute.xlu2 %87 }
  0x8c   :  { %v70_v18 = vadd.f32 %v69_v17, %v652_v16 }
  0x8d   :  { %v154_v29 = vmax.f32 %v150_v21, 0.0 }
  0x8e   :  { %v73_v20 = vmax.f32 %v70_v18, 0.0 }
  0x90   :  { %v74_v22 = vpack.c.bf16 %v73_v20, %v72_v19 }
  0x92   :  { %v151_v23 = vpop.f32.mrf.mxu2  ;;  %119 = vmatpush.bf16.msra.mxu1 %v74_v22  ;;  %546 = vmatpush.bf16.msra.mxu3 %v74_v22 }
  0x93   :  { %v152_v26 = vadd.f32 %v151_v23, %v652_v16  ;;  %v198_v27 = vpop.f32.mrf.mxu0 }
  0x94   :  { %v199_v35 = vadd.f32 %v198_v27, %v649_v12 }
  0x95   :  { %v155_v30 = vmax.f32 %v152_v26, 0.0  ;;  %514 = vmatmul.msk.bf16.vlgmr.msra.gmra.mxu3 %vm105_vm2, %v659_v24  ;;  %513 = vmatmul.msk.bf16.vlgmr.msra.gmra.mxu1 %vm105_vm2, %v664_v25 }
  0x96   :  { %v203_v40 = vmax.f32 %v199_v35, 0.0  ;;  %v735_v35 = vpop.permute.xlu2 %92 }
  0x97   :  { %v156_v31 = vpack.c.bf16 %v155_v30, %v154_v29 }
  0x99   :  { %164 = vmatpush.bf16.msrb.mxu3 %v156_v31 }
  0x9b   :  { %v200_v36 = vpop.f32.mrf.mxu0 }
  0x9c   :  { %v201_v37 = vadd.f32 %v200_v36, %v652_v16 }
  0x9d   :  { %294 = vmatpush.bf16.msra.mxu3 %v285_v32 }
  0x9e   :  { %v204_v41 = vmax.f32 %v201_v37, 0.0 }
  0xa0   :  { %v205_v42 = vpack.c.bf16 %v204_v41, %v203_v40 }
  0xa2   :  { %213 = vmatpush.bf16.msrb.mxu2 %v205_v42 }
  0xa3   :  { %v247_v44 = vpop.f32.mrf.mxu0 }
  0xa4   :  { %v248_v46 = vadd.f32 %v247_v44, %v649_v12 }
  0xa5   :  { %517 = vmatmul.msk.bf16.vlgmr.msrb.gmra.mxu3 %vm105_vm2, %v664_v25  ;;  %521 = vmatmul.msk.bf16.vlgmr.msrb.gmra.mxu2 %vm105_vm2, %v664_v25 }
  0xa6   :  { %343 = vmatpush.bf16.msra.mxu2 %v334_v43  ;;  %v252_v50 = vmax.f32 %v248_v46, 0.0 }
  0xab   :  { %v249_v47 = vpop.f32.mrf.mxu0 }
  0xac   :  { %v250_v48 = vadd.f32 %v249_v47, %v652_v16 }
  0xae   :  { %v253_v51 = vmax.f32 %v250_v48, 0.0 }
  0xb0   :  { %v254_v52 = vpack.c.bf16 %v253_v51, %v252_v50 }
  0xb2   :  { %262 = vmatpush.bf16.msrb.mxu1 %v254_v52 }
  0xb5   :  { %518 = vmatmul.msk.bf16.gmra.mxu3 %vm105_vm2, %v659_v24  ;;  %522 = vmatmul.msk.bf16.gmra.mxu2 %vm105_vm2, %v659_v24 }
  0xb6   :  { %392 = vmatpush.bf16.msra.mxu1 %v383_v53 }
  0xb7   :  { %525 = vmatmul.msk.bf16.vlgmr.msrb.gmra.mxu1 %vm105_vm2, %v664_v25 }
  0xc5   :  { %528 = vmatmul.msk.bf16.vlgmr.msra.gmra.mxu3 %vm50_vm1, %v625_v4  ;;  %532 = vmatmul.msk.bf16.vlgmr.msra.gmra.mxu2 %vm50_vm1, %v625_v4 }
  0xc7   :  { %526 = vmatmul.msk.bf16.gmra.mxu1 %vm105_vm2, %v659_v24 }
  0xd7   :  { %536 = vmatmul.msk.bf16.vlgmr.msra.gmra.mxu1 %vm50_vm1, %v625_v4 }
 0x112   :  { %v121_v55 = vpop.f32.mrf.mxu1 }
 0x113   :  { %v122_v58 = vadd.f32 %v121_v55, %v717_v57 }
 0x115   :  { %v131_v61 = vmax.f32 %v122_v58, 0.0 }
 0x118   :  { %v126_v54 = vpop.f32.mrf.mxu3 }
 0x119   :  { %v127_v22 = vadd.f32 %v126_v54, %v727_v14 }
 0x11a   :  { %v123_v0 = vpop.f32.mrf.mxu1 }
 0x11b   :  { %v124_v6 = vadd.f32 %v123_v0, %v722_v1  ;;  %v133_v31 = vmax.f32 %v127_v22, 0.0 }
 0x11d   :  { %v132_v10 = vmax.f32 %v124_v6, 0.0  ;;  %v539_v6 = vld [vmem:[%s793_s0 + $0x1c] sm:$0xf]  ;;  %s581_s0 = smov [#allocation2]  }
 0x11e   :  { %s486_s23 = sshll.u32 %s581_s0, 4  ;;  %s487_s23 = int_to_ptr.vmem [resolvable:$true] %s486_s23 }
 0x120   :  { %v128_v56 = vpop.f32.mrf.mxu3 }
 0x121   :  { %v129_v39 = vadd.f32 %v128_v56, %v735_v35 }
 0x123   :  { %v134_v46 = vmax.f32 %v129_v39, 0.0 }
 0x128   :  { %v166_v59 = vpop.f32.mrf.mxu3  ;;  %v215_v60 = vpop.f32.mrf.mxu2 }
 0x129   :  { %v167_v62 = vadd.f32 %v166_v59, %v717_v57  ;;  %v216_v63 = vadd.f32 %v215_v60, %v717_v57 }
 0x12b   :  { %v176_v2 = vmax.f32 %v167_v62, 0.0  ;;  %v225_v3 = vmax.f32 %v216_v63, 0.0 }
 0x12d   :  { %v180_v5 = vmax.f32 %v131_v61, %v176_v2 }
 0x12f   :  { %v229_v7 = vmax.f32 %v180_v5, %v225_v3 }
 0x130   :  { %v168_v8 = vpop.f32.mrf.mxu3  ;;  %v217_v9 = vpop.f32.mrf.mxu2 }
 0x131   :  { %v169_v11 = vadd.f32 %v168_v8, %v722_v1  ;;  %v218_v13 = vadd.f32 %v217_v9, %v722_v1 }
 0x133   :  { %v177_v15 = vmax.f32 %v169_v11, 0.0  ;;  %v226_v17 = vmax.f32 %v218_v13, 0.0 }
 0x134   :  { %v264_v18 = vpop.f32.mrf.mxu1 }
 0x135   :  { %v265_v19 = vadd.f32 %v264_v18, %v717_v57  ;;  %v181_v20 = vmax.f32 %v132_v10, %v177_v15 }
 0x137   :  { %v274_v21 = vmax.f32 %v265_v19, 0.0  ;;  %v230_v23 = vmax.f32 %v181_v20, %v226_v17  ;;  %v432_v17 = vsel %vm54_vm0, %v539_v6, 0 }
 0x138   :  { %v171_v27 = vpop.f32.mrf.mxu3  ;;  %v220_v28 = vpop.f32.mrf.mxu2 }
 0x139   :  { %v731_v26 = vmax.f32 %v229_v7, %v274_v21  ;;  %v172_v29 = vadd.f32 %v171_v27, %v727_v14  ;;  %v221_v30 = vadd.f32 %v220_v28, %v727_v14 }
 0x13b   :  { %v178_v32 = vmax.f32 %v172_v29, 0.0  ;;  %v227_v33 = vmax.f32 %v221_v30, 0.0 }
 0x13c   :  { %v266_v34 = vpop.f32.mrf.mxu1 }
 0x13d   :  { %v267_v36 = vadd.f32 %v266_v34, %v722_v1  ;;  %v182_v37 = vmax.f32 %v133_v31, %v178_v32 }
 0x13f   :  { %v275_v38 = vmax.f32 %v267_v36, 0.0  ;;  %v231_v40 = vmax.f32 %v182_v37, %v227_v33 }
 0x140   :  { %v173_v42 = vpop.f32.mrf.mxu3  ;;  %v222_v43 = vpop.f32.mrf.mxu2 }
 0x141   :  { %v279_v41 = vmax.f32 %v230_v23, %v275_v38  ;;  %v174_v44 = vadd.f32 %v173_v42, %v735_v35  ;;  %v223_v45 = vadd.f32 %v222_v43, %v735_v35 }
 0x143   :  { %v179_v47 = vmax.f32 %v174_v44, 0.0  ;;  %v228_v48 = vmax.f32 %v223_v45, 0.0 }
 0x144   :  { %v269_v49 = vpop.f32.mrf.mxu1 }
 0x145   :  { %v270_v50 = vadd.f32 %v269_v49, %v727_v14  ;;  %v183_v51 = vmax.f32 %v134_v46, %v179_v47 }
 0x147   :  { %v276_v52 = vmax.f32 %v270_v50, 0.0  ;;  %v232_v53 = vmax.f32 %v183_v51, %v228_v48 }
 0x148   :  { %v296_v55 = vpop.f32.mrf.mxu3  ;;  %v345_v56 = vpop.f32.mrf.mxu2 }
 0x149   :  { %v280_v54 = vmax.f32 %v231_v40, %v276_v52  ;;  %v297_v61 = vadd.f32 %v296_v55, %v649_v12  ;;  %v346_v62 = vadd.f32 %v345_v56, %v649_v12 }
 0x14b   :  { %v301_v7 = vmax.f32 %v297_v61, 0.0  ;;  %v350_v8 = vmax.f32 %v346_v62, 0.0 }
 0x14c   :  { %v271_v58 = vpop.f32.mrf.mxu1 }
 0x14d   :  { %v272_v59 = vadd.f32 %v271_v58, %v735_v35 }
 0x14f   :  { %v277_v60 = vmax.f32 %v272_v59, 0.0 }
 0x150   :  { %v298_v0 = vpop.f32.mrf.mxu3  ;;  %v347_v2 = vpop.f32.mrf.mxu2 }
 0x151   :  { %v281_v63 = vmax.f32 %v232_v53, %v277_v60  ;;  %v299_v3 = vadd.f32 %v298_v0, %v652_v16  ;;  %v348_v5 = vadd.f32 %v347_v2, %v652_v16 }
 0x153   :  { %v302_v9 = vmax.f32 %v299_v3, 0.0  ;;  %v351_v10 = vmax.f32 %v348_v5, 0.0 }
 0x154   :  { %v394_v11 = vpop.f32.mrf.mxu1 }
 0x155   :  { %v303_v13 = vpack.c.bf16 %v302_v9, %v301_v7  ;;  %v352_v15 = vpack.c.bf16 %v351_v10, %v350_v8  ;;  %v395_v18 = vadd.f32 %v394_v11, %v649_v12 }
 0x157   :  { %311 = vmatpush.bf16.msrb.mxu0 %v303_v13  ;;  %360 = vmatpush.bf16.msrb.mxu3 %v352_v15  ;;  %v399_v21 = vmax.f32 %v395_v18, 0.0 }
 0x15a   :  { %529 = vmatmul.msk.bf16.vlgmr.msrb.gmra.mxu0 %vm105_vm2, %v664_v25  ;;  %533 = vmatmul.msk.bf16.vlgmr.msrb.gmra.mxu3 %vm105_vm2, %v664_v25 }
 0x15b   :  { %441 = vmatpush.bf16.msra.mxu0 %v432_v17 }
 0x15c   :  { %v396_v19 = vpop.f32.mrf.mxu1 }
 0x15d   :  { %v397_v20 = vadd.f32 %v396_v19, %v652_v16 }
 0x15f   :  { %v400_v22 = vmax.f32 %v397_v20, 0.0 }
 0x161   :  { %v401_v23 = vpack.c.bf16 %v400_v22, %v399_v21 }
 0x163   :  { %409 = vmatpush.bf16.msrb.mxu2 %v401_v23 }
 0x166   :  { %537 = vmatmul.msk.bf16.vlgmr.msrb.gmra.mxu2 %vm105_vm2, %v664_v25 }
 0x16a   :  { %530 = vmatmul.msk.bf16.gmra.mxu0 %vm105_vm2, %v659_v24  ;;  %534 = vmatmul.msk.bf16.gmra.mxu3 %vm105_vm2, %v659_v24 }
 0x176   :  { %538 = vmatmul.msk.bf16.gmra.mxu2 %vm105_vm2, %v659_v24 }
 0x17a   :  { %540 = vmatmul.msk.bf16.vlgmr.msra.gmra.mxu0 %vm50_vm1, %v625_v4 }
 0x1d7   :  { %v313_v27 = vpop.f32.mrf.mxu0 }
 0x1d8   :  { %v314_v28 = vadd.f32 %v313_v27, %v717_v57 }
 0x1da   :  { %v323_v29 = vmax.f32 %v314_v28, 0.0 }
 0x1dc   :  { %v327_v30 = vmax.f32 %v731_v26, %v323_v29 }
 0x1df   :  { %v315_v31 = vpop.f32.mrf.mxu0 }
 0x1e0   :  { %v316_v32 = vadd.f32 %v315_v31, %v722_v1 }
 0x1e2   :  { %v324_v33 = vmax.f32 %v316_v32, 0.0 }
 0x1e4   :  { %v328_v34 = vmax.f32 %v279_v41, %v324_v33  ;;  %v362_v41 = vpop.f32.mrf.mxu3 }
 0x1e5   :  { %v363_v51 = vadd.f32 %v362_v41, %v717_v57 }
 0x1e7   :  { %v318_v36 = vpop.f32.mrf.mxu0 }
 0x1e8   :  { %v319_v37 = vadd.f32 %v318_v36, %v727_v14 }
 0x1e9   :  { %v411_v50 = vpop.f32.mrf.mxu2 }
 0x1ea   :  { %v325_v38 = vmax.f32 %v319_v37, 0.0 }
 0x1ec   :  { %v329_v39 = vmax.f32 %v280_v54, %v325_v38  ;;  %v364_v52 = vpop.f32.mrf.mxu3  ;;  %v372_v54 = vmax.f32 %v363_v51, 0.0 }
 0x1ed   :  { %v365_v58 = vadd.f32 %v364_v52, %v722_v1 }
 0x1ee   :  { %v376_v56 = vmax.f32 %v327_v30, %v372_v54 }
 0x1ef   :  { %v320_v40 = vpop.f32.mrf.mxu0  ;;  %v373_v62 = vmax.f32 %v365_v58, 0.0 }
 0x1f0   :  { %v321_v42 = vadd.f32 %v320_v40, %v735_v35 }
 0x1f1   :  { %v413_v53 = vpop.f32.mrf.mxu2  ;;  %v377_v5 = vmax.f32 %v328_v34, %v373_v62 }
 0x1f2   :  { %v326_v4 = vmax.f32 %v321_v42, 0.0  ;;  %v414_v60 = vadd.f32 %v413_v53, %v722_v1 }
 0x1f4   :  { %v330_v43 = vmax.f32 %v281_v63, %v326_v4  ;;  %v367_v61 = vpop.f32.mrf.mxu3  ;;  %v422_v2 = vmax.f32 %v414_v60, 0.0 }
 0x1f5   :  { %v368_v6 = vadd.f32 %v367_v61, %v727_v14 }
 0x1f6   :  { %v426_v8 = vmax.f32 %v377_v5, %v422_v2 }
 0x1f7   :  { %v443_v44 = vpop.f32.mrf.mxu0  ;;  %v374_v10 = vmax.f32 %v368_v6, 0.0 }
 0x1f8   :  { %v444_v45 = vadd.f32 %v443_v44, %v649_v12  ;;  %v412_v12 = vadd.f32 %v411_v50, %v717_v57 }
 0x1f9   :  { %v416_v0 = vpop.f32.mrf.mxu2  ;;  %v378_v19 = vmax.f32 %v329_v39, %v374_v10 }
 0x1fa   :  { %v448_v47 = vmax.f32 %v444_v45, 0.0  ;;  %v417_v9 = vadd.f32 %v416_v0, %v727_v14 }
 0x1fc   :  { %v369_v13 = vpop.f32.mrf.mxu3  ;;  %v423_v15 = vmax.f32 %v417_v9, 0.0 }
 0x1fd   :  { %v370_v20 = vadd.f32 %v369_v13, %v735_v35 }
 0x1fe   :  { %v427_v22 = vmax.f32 %v378_v19, %v423_v15 }
 0x1ff   :  { %v445_v46 = vpop.f32.mrf.mxu0  ;;  %v375_v27 = vmax.f32 %v370_v20, 0.0 }
 0x200   :  { %v446_v26 = vadd.f32 %v445_v46, %v652_v16  ;;  %v421_v16 = vmax.f32 %v412_v12, 0.0 }
 0x201   :  { %v418_v17 = vpop.f32.mrf.mxu2  ;;  %v379_v31 = vmax.f32 %v330_v43, %v375_v27 }
 0x202   :  { %v449_v48 = vmax.f32 %v446_v26, 0.0  ;;  %v419_v23 = vadd.f32 %v418_v17, %v735_v35 }
 0x204   :  { %v450_v49 = vpack.c.bf16 %v449_v48, %v448_v47  ;;  %v424_v29 = vmax.f32 %v419_v23, 0.0 }
 0x206   :  { %458 = vmatpush.bf16.msrb.mxu1 %v450_v49  ;;  %v428_v33 = vmax.f32 %v379_v31, %v424_v29 }
 0x209   :  { %541 = vmatmul.msk.bf16.vlgmr.msrb.gmra.mxu1 %vm105_vm2, %v664_v25  ;;  %v425_v25 = vmax.f32 %v376_v56, %v421_v16 }
 0x219   :  { %542 = vmatmul.msk.bf16.gmra.mxu1 %vm105_vm2, %v659_v24 }
 0x286   :  { %v460_v55 = vpop.f32.mrf.mxu1 }
 0x287   :  { %v461_v59 = vadd.f32 %v460_v55, %v717_v57 }
 0x289   :  { %v470_v24 = vmax.f32 %v461_v59, 0.0 }
 0x28b   :  { %v474_v63 = vmax.f32 %v425_v25, %v470_v24 }
 0x28d   :  { %478 = vst [vmem:[#allocation2] sm:$0xff] %v474_v63 }
 0x28e   :  { %v462_v3 = vpop.f32.mrf.mxu1 }
 0x28f   :  { %v463_v7 = vadd.f32 %v462_v3, %v722_v1 }
 0x291   :  { %v471_v57 = vmax.f32 %v463_v7, 0.0 }
 0x293   :  { %v475_v11 = vmax.f32 %v426_v8, %v471_v57 }
 0x295   :  { %479 = vst [vmem:[#allocation2 + $0x8] sm:$0xff] %v475_v11 }
 0x296   :  { %v465_v18 = vpop.f32.mrf.mxu1 }
 0x297   :  { %v466_v21 = vadd.f32 %v465_v18, %v727_v14 }
 0x299   :  { %v472_v1 = vmax.f32 %v466_v21, 0.0 }
 0x29b   :  { %v476_v28 = vmax.f32 %v427_v22, %v472_v1 }
 0x29d   :  { %480 = vst [vmem:[#allocation2 + $0x10] sm:$0xff] %v476_v28 }
 0x29e   :  { %v467_v30 = vpop.f32.mrf.mxu1 }
 0x29f   :  { %v468_v32 = vadd.f32 %v467_v30, %v735_v35 }
 0x2a1   :  { %v473_v14 = vmax.f32 %v468_v32, 0.0 }
 0x2a3   :  { %v477_v34 = vmax.f32 %v428_v33, %v473_v14 }
 0x2a5   :  { %481 = vst [vmem:[#allocation2 + $0x18] sm:$0xff] %v477_v34 }
 0x2a6   :  { %494 = dma.vmem_to_hbm [thread:$0]  %s487_s23, 512, %s489_s26, [#allocation3], %s582_s27, %s582_s27, %s583_s28  }
 0x2a7   :  { %578 = dma.done.wait [#allocation3], 512  }
 0x2a8   :  { %579 = vsyncadd [#allocation3], 4294966784 }
 0x2a9   :  { %499 = vsyncpa [#allocation3], 1 }

</bundles_post_ra>
